<compile_context>
chip_gen: v6e
topology: v6e:2x2x1
jax: 0.10.0
libtpu: 0.0.40
codegen_flags: <defaults>
</compile_context>

<pallas_src>
import math

import jax
import jax.numpy as jnp
from jax import lax
from jax.experimental import pallas as pl
from jax.experimental.pallas import tpu as pltpu


def _vmem_capacity_bytes():
    """Physical per-core VMEM; conservative 64 MiB fallback if the query fails."""
    try:
        info = pltpu.get_tpu_info()
        cap = getattr(info, "vmem_capacity_bytes", None)
        if cap:
            return int(cap)
    except Exception:
        pass
    return 64 << 20


def _pick_q_tile(seq_len, fits):
    """Largest divisor of seq_len that fits the VMEM budget, preferring 32-alignment."""
    divisors = sorted((d for d in range(1, seq_len + 1) if seq_len % d == 0),
                      reverse=True)
    for align in (32, 8, 1):
        for d in divisors:
            if d % align == 0 and fits(d):
                return d
    # Nothing fits the budget (extremely long S): fall back to the smallest aligned
    # divisor and let the scoped-VMEM limit absorb it.
    for align in (32, 8, 1):
        aligned = [d for d in divisors if d % align == 0]
        if aligned:
            return min(aligned)
    return seq_len


def _attention_body(q_ref, k_ref, v_ref, mask_ref, w_ref, out_ref, prob_ref,
                    *, causal, matmul_dtype):
    # Per-grid-step refs:
    #   q_ref    : (1, TQ, D)   query tile
    #   k_ref    : (1, S,  D)   full key   (VMEM-resident across q-tiles of this batch)
    #   v_ref    : (1, S,  D)   full value
    #   mask_ref : (1, TQ, S)   int8, nonzero == masked   (None when causal=True)
    #   w_ref    : (D, D)       shared nn.Linear weight (out, in)
    #   out_ref  : (1, TQ, D)
    #   prob_ref : (1, TQ, S)   or None when the prob output is elided
    d = q_ref.shape[-1]
    scale = 1.0 / math.sqrt(d)

    q = q_ref[0]
    k = k_ref[0]
    v = v_ref[0]
    w = w_ref[...]

    mm_dtype = matmul_dtype if matmul_dtype is not None else q.dtype

    # Fold 1/sqrt(D) into Q: TQxD VPU work instead of TQxS.
    qs = (q * jnp.asarray(scale, dtype=q.dtype)).astype(mm_dtype)
    wm = w.astype(mm_dtype)
    km = k.astype(mm_dtype)
    vm = v.astype(mm_dtype)

    # scores = (Q*scale) @ W @ K^T, transpose-free (no XLU transposes / VMEM copies):
    #   qw[i,e]     = sum_d qs[i,d] * W[d,e]
    #   scores[i,j] = sum_e qw[i,e] * K[j,e]
    qw = lax.dot_general(qs, wm, (((1,), (0,)), ((), ())),
                         preferred_element_type=jnp.float32)            # (TQ, D) f32
    scores = lax.dot_general(qw.astype(mm_dtype), km, (((1,), (1,)), ((), ())),
                             preferred_element_type=jnp.float32)        # (TQ, S) f32

    tq, s = scores.shape
    neg = jnp.float32(-1000000000.0)
    if causal:
        # Mask generated in-kernel: no (B,S,S) mask stream from HBM.
        row = pl.program_id(1) * tq + lax.broadcasted_iota(jnp.int32, (tq, s), 0)
        col = lax.broadcasted_iota(jnp.int32, (tq, s), 1)
        scores = jnp.where(col > row, neg, scores)
    else:
        m = mask_ref[0]                                                 # (TQ, S) int8
        scores = jnp.where(m != 0, neg, scores)

    # Numerically stable softmax along keys; exact division (HBM-bound => free),
    # so returned probabilities sum to 1.
    smax = jnp.max(scores, axis=-1, keepdims=True)
    p = jnp.exp(scores - smax)
    denom = jnp.sum(p, axis=-1, keepdims=True)
    prob = p / denom                                                    # (TQ, S) f32

    out = lax.dot_general(prob.astype(mm_dtype), vm, (((1,), (0,)), ((), ())),
                          preferred_element_type=jnp.float32)           # (TQ, D) f32

    out_ref[0] = out.astype(out_ref.dtype)
    if prob_ref is not None:
        prob_ref[0] = prob.astype(prob_ref.dtype)


def general_attention(query, key, value, mask, weight, *,
                      causal=False, return_prob=True, prob_dtype=None,
                      q_tile=None, matmul_dtype=None):
    """Pallas wrapper.

    Returns (attended_values, prob_attn) like the PyTorch module when
    return_prob=True, else only the attended values. `mask` is ignored (may be
    None) when causal=True.
    """
    B, S, D = query.shape
    if prob_dtype is None:
        prob_dtype = query.dtype

    in_itm = jnp.dtype(query.dtype).itemsize
    prob_itm = jnp.dtype(prob_dtype).itemsize
    dense_mask = not causal

    vmem_cap = _vmem_capacity_bytes()

    def per_step_bytes(tq):
        b = 2 * tq * D * in_itm                  # q tile stream (double-buffered)
        b += 2 * tq * D * in_itm                 # out tile stream
        if dense_mask:
            b += 2 * tq * S                      # int8 mask stream
        if return_prob:
            b += 2 * tq * S * prob_itm           # prob tile stream
        b += 2 * 2 * S * D * in_itm              # resident K + V (double-buffered)
        b += 2 * D * D * in_itm                  # W
        b += 3 * tq * S * 4                      # scores / exp / prob live f32 slabs
        b += tq * D * 4                          # qw
        return b

    budget = vmem_cap // 2                       # keep live slabs under ~50% of VMEM
    if q_tile is not None:
        TQ = q_tile
        assert S % TQ == 0, "q_tile must divide the sequence length"
    else:
        TQ = _pick_q_tile(S, lambda tq: per_step_bytes(tq) <= budget)
    n_qt = S // TQ

    # Generation-dependent scoped-VMEM ceiling (~100 MiB on 128 MiB parts, ~48 MiB on v7x).
    vmem_ceiling = int(min(0.78 * vmem_cap, 100 << 20))
    vmem_limit = int(min(max(int(per_step_bytes(TQ) * 1.3), 16 << 20), vmem_ceiling))

    def kernel(*refs):
        if dense_mask:
            q_ref, k_ref, v_ref, m_ref, w_ref = refs[:5]
            rest = refs[5:]
        else:
            q_ref, k_ref, v_ref, w_ref = refs[:4]
            m_ref = None
            rest = refs[4:]
        out_ref = rest[0]
        prob_ref = rest[1] if return_prob else None
        _attention_body(q_ref, k_ref, v_ref, m_ref, w_ref, out_ref, prob_ref,
                        causal=causal, matmul_dtype=matmul_dtype)

    in_specs = [
        pl.BlockSpec((1, TQ, D), lambda b, qi: (b, qi, 0)),   # query tile
        pl.BlockSpec((1, S, D),  lambda b, qi: (b, 0, 0)),    # key   (full S, resident)
        pl.BlockSpec((1, S, D),  lambda b, qi: (b, 0, 0)),    # value (full S, resident)
    ]
    inputs = [query, key, value]
    if dense_mask:
        # Stream the mask as int8 (nonzero == masked): 4x less HBM traffic than f32.
        in_specs.append(pl.BlockSpec((1, TQ, S), lambda b, qi: (b, qi, 0)))
        inputs.append(mask.astype(jnp.int8))
    in_specs.append(pl.BlockSpec((D, D), lambda b, qi: (0, 0)))        # linear weight
    inputs.append(weight)

    out_spec_o = pl.BlockSpec((1, TQ, D), lambda b, qi: (b, qi, 0))
    out_shape_o = jax.ShapeDtypeStruct((B, S, D), query.dtype)
    if return_prob:
        out_specs = [out_spec_o,
                     pl.BlockSpec((1, TQ, S), lambda b, qi: (b, qi, 0))]
        out_shape = (out_shape_o, jax.ShapeDtypeStruct((B, S, S), prob_dtype))
    else:
        out_specs = out_spec_o
        out_shape = out_shape_o

    # Prefer sharding the two TensorCores over batch (keeps K/V residency per core);
    # only let the q-tile axis split cores when there is a single batch element.
    semantics = ("parallel", "arbitrary") if B >= 2 else ("parallel", "parallel")

    grid_spec = pltpu.PrefetchScalarGridSpec(
        num_scalar_prefetch=0,
        grid=(B, n_qt),
        in_specs=in_specs,
        out_specs=out_specs,
    )

    return pl.pallas_call(
        kernel,
        out_shape=out_shape,
        grid_spec=grid_spec,
        compiler_params=pltpu.CompilerParams(
            dimension_semantics=semantics,
            vmem_limit_bytes=vmem_limit,
        ),
    )(*inputs)


def _reference(query, key, value, mask, weight):
    """Pure-JAX reference matching the PyTorch forward."""
    kw = key @ weight.T
    scores = query @ jnp.swapaxes(kw, -2, -1)
    scores = scores / math.sqrt(query.shape[-1])
    scores = jnp.where(mask, -1000000000.0, scores)
    prob = jax.nn.softmax(scores, axis=-1)
    return prob @ value, prob


if __name__ == "__main__":
    B, S, D = 2, 8, 32   # batch, seq, head_size

    key0 = jax.random.PRNGKey(0)
    kq, kk, kv, kw_ = jax.random.split(key0, 4)

    query = jax.random.normal(kq, (B, S, D), dtype=jnp.float32)
    key_ = jax.random.normal(kk, (B, S, D), dtype=jnp.float32)
    value = jax.random.normal(kv, (B, S, D), dtype=jnp.float32)

    # Deterministic nn.Linear(head_size, head_size, bias=False)-style init:
    # uniform(-1/sqrt(D), 1/sqrt(D)), shape (out_features, in_features) = (D, D).
    bound = 1.0 / math.sqrt(D)
    weight = jax.random.uniform(kw_, (D, D), dtype=jnp.float32,
                                minval=-bound, maxval=bound)

    # Causal mask: True above the diagonal == masked.
    causal_mask = jnp.triu(jnp.ones((S, S), dtype=bool), k=1)
    mask = jnp.broadcast_to(causal_mask, (B, S, S))

    ref_out, ref_prob = _reference(query, key_, value, mask, weight)

    # 1) General path: arbitrary mask streamed from HBM as int8 (matches the module API).
    out, prob = general_attention(query, key_, value, mask, weight)
    out = jax.block_until_ready(out)
    prob = jax.block_until_ready(prob)
    assert jnp.allclose(out, ref_out, atol=1e-4, rtol=1e-4)
    assert jnp.allclose(prob, ref_prob, atol=1e-4, rtol=1e-4)

    # 2) Optimized causal path: mask generated in-kernel (no (B,S,S) HBM mask stream).
    out_c, prob_c = general_attention(query, key_, value, None, weight, causal=True)
    out_c = jax.block_until_ready(out_c)
    prob_c = jax.block_until_ready(prob_c)
    assert jnp.allclose(out_c, ref_out, atol=1e-4, rtol=1e-4)
    assert jnp.allclose(prob_c, ref_prob, atol=1e-4, rtol=1e-4)

    # 3) Values-only path: the dominant (B,S,S) prob HBM write is elided entirely.
    out_v = general_attention(query, key_, value, mask, weight, return_prob=False)
    out_v = jax.block_until_ready(out_v)
    assert jnp.allclose(out_v, ref_out, atol=1e-4, rtol=1e-4)

    print("KERNEL_OK")
</pallas_src>

<mosaic_0001>
module attributes {stable_mosaic.version = 11 : i64} {
  func.func @kernel(%arg0: i32, %arg1: i32, %arg2: memref<1x8x32xf32, #tpu.memory_space<vmem>>, %arg3: memref<1x8x32xf32, #tpu.memory_space<vmem>>, %arg4: memref<1x8x32xf32, #tpu.memory_space<vmem>>, %arg5: memref<1x8x8xi8, #tpu.memory_space<vmem>>, %arg6: memref<32x32xf32, #tpu.memory_space<vmem>>, %arg7: memref<1x8x32xf32, #tpu.memory_space<vmem>>, %arg8: memref<1x8x8xf32, #tpu.memory_space<vmem>>) attributes {dimension_semantics = [#tpu.dimension_semantics<parallel>, #tpu.dimension_semantics<arbitrary>], iteration_bounds = array<i64: 2, 1>, scalar_prefetch = 0 : i64, scratch_operands = 0 : i64, tpu.core_type = #tpu.core_type<tc>, window_params = [{transform_indices = @transform_0, window_bounds = array<i64: 1, 8, 32>}, {transform_indices = @transform_1, window_bounds = array<i64: 1, 8, 32>}, {transform_indices = @transform_2, window_bounds = array<i64: 1, 8, 32>}, {transform_indices = @transform_3, window_bounds = array<i64: 1, 8, 8>}, {pipeline_mode = #tpu.pipeline_mode<synchronous>, transform_indices = @transform_4, window_bounds = array<i64: 32, 32>}, {transform_indices = @transform_5, window_bounds = array<i64: 1, 8, 32>}, {transform_indices = @transform_6, window_bounds = array<i64: 1, 8, 8>}]} {
    %c0 = arith.constant 0 : index
    %c0_0 = arith.constant 0 : index
    %c0_1 = arith.constant 0 : index
    %0 = vector.load %arg2[%c0, %c0_0, %c0_1] : memref<1x8x32xf32, #tpu.memory_space<vmem>>, vector<1x8x32xf32>
    %1 = vector.shape_cast %0 : vector<1x8x32xf32> to vector<8x32xf32>
    %c0_2 = arith.constant 0 : index
    %c0_3 = arith.constant 0 : index
    %c0_4 = arith.constant 0 : index
    %2 = vector.load %arg3[%c0_2, %c0_3, %c0_4] : memref<1x8x32xf32, #tpu.memory_space<vmem>>, vector<1x8x32xf32>
    %3 = vector.shape_cast %2 : vector<1x8x32xf32> to vector<8x32xf32>
    %c0_5 = arith.constant 0 : index
    %c0_6 = arith.constant 0 : index
    %c0_7 = arith.constant 0 : index
    %4 = vector.load %arg4[%c0_5, %c0_6, %c0_7] : memref<1x8x32xf32, #tpu.memory_space<vmem>>, vector<1x8x32xf32>
    %5 = vector.shape_cast %4 : vector<1x8x32xf32> to vector<8x32xf32>
    %c0_8 = arith.constant 0 : index
    %c0_9 = arith.constant 0 : index
    %6 = vector.load %arg6[%c0_8, %c0_9] : memref<32x32xf32, #tpu.memory_space<vmem>>, vector<32x32xf32>
    %cst = arith.constant 0.176776692 : f32
    %7 = vector.broadcast %cst : f32 to vector<8x32xf32>
    %8 = arith.mulf %1, %7 : vector<8x32xf32>
    %cst_10 = arith.constant dense<0.000000e+00> : vector<8x32xf32>
    %9 = tpu.matmul %8, %6, %cst_10 {dimension_numbers = #tpu.dot_dimension_numbers<[1], [0], [0], [1], [0, 0, 1, 1], [], []>} : vector<8x32xf32>, vector<32x32xf32>, vector<8x32xf32> -> vector<8x32xf32>
    %cst_11 = arith.constant dense<0.000000e+00> : vector<8x8xf32>
    %10 = tpu.matmul %9, %3, %cst_11 {dimension_numbers = #tpu.dot_dimension_numbers<[1], [1], [0], [0], [0, 0, 1, 0], [], []>} : vector<8x32xf32>, vector<8x32xf32>, vector<8x8xf32> -> vector<8x8xf32>
    %c0_12 = arith.constant 0 : index
    %c0_13 = arith.constant 0 : index
    %c0_14 = arith.constant 0 : index
    %11 = vector.load %arg5[%c0_12, %c0_13, %c0_14] : memref<1x8x8xi8, #tpu.memory_space<vmem>>, vector<1x8x8xi8>
    %12 = vector.shape_cast %11 : vector<1x8x8xi8> to vector<8x8xi8>
    %c0_i8 = arith.constant 0 : i8
    %13 = vector.broadcast %c0_i8 : i8 to vector<8x8xi8>
    %14 = arith.cmpi ne, %12, %13 : vector<8x8xi8>
    %cst_15 = arith.constant -1.000000e+09 : f32
    %15 = vector.broadcast %cst_15 : f32 to vector<8x8xf32>
    %16 = arith.select %14, %15, %10 : vector<8x8xi1>, vector<8x8xf32>
    %cst_16 = arith.constant dense<0xFF800000> : vector<8xf32>
    %17 = vector.multi_reduction <maximumf>, %16, %cst_16 [1] : vector<8x8xf32> to vector<8xf32>
    %18 = vector.shape_cast %17 : vector<8xf32> to vector<8x1xf32>
    %19 = vector.broadcast %18 : vector<8x1xf32> to vector<8x8xf32>
    %20 = arith.subf %16, %19 : vector<8x8xf32>
    %21 = math.exp %20 : vector<8x8xf32>
    %cst_17 = arith.constant dense<0.000000e+00> : vector<8xf32>
    %22 = vector.multi_reduction <add>, %21, %cst_17 [1] : vector<8x8xf32> to vector<8xf32>
    %23 = vector.shape_cast %22 : vector<8xf32> to vector<8x1xf32>
    %24 = vector.broadcast %23 : vector<8x1xf32> to vector<8x8xf32>
    %25 = arith.divf %21, %24 : vector<8x8xf32>
    %cst_18 = arith.constant dense<0.000000e+00> : vector<8x32xf32>
    %26 = tpu.matmul %25, %5, %cst_18 {dimension_numbers = #tpu.dot_dimension_numbers<[1], [0], [0], [1], [0, 0, 1, 1], [], []>} : vector<8x8xf32>, vector<8x32xf32>, vector<8x32xf32> -> vector<8x32xf32>
    %c0_19 = arith.constant 0 : index
    %c0_20 = arith.constant 0 : index
    %c0_21 = arith.constant 0 : index
    %27 = vector.load %arg7[%c0_19, %c0_20, %c0_21] : memref<1x8x32xf32, #tpu.memory_space<vmem>>, vector<1x8x32xf32>
    %28 = vector.shape_cast %27 : vector<1x8x32xf32> to vector<8x32xf32>
    %29 = vector.shape_cast %26 : vector<8x32xf32> to vector<1x8x32xf32>
    tpu.vector_store %arg7[%c0_19, %c0_20, %c0_21], %29 {strides = array<i32>} : memref<1x8x32xf32, #tpu.memory_space<vmem>>, vector<1x8x32xf32>,
    %c0_22 = arith.constant 0 : index
    %c0_23 = arith.constant 0 : index
    %c0_24 = arith.constant 0 : index
    %30 = vector.load %arg8[%c0_22, %c0_23, %c0_24] : memref<1x8x8xf32, #tpu.memory_space<vmem>>, vector<1x8x8xf32>
    %31 = vector.shape_cast %30 : vector<1x8x8xf32> to vector<8x8xf32>
    %32 = vector.shape_cast %25 : vector<8x8xf32> to vector<1x8x8xf32>
    tpu.vector_store %arg8[%c0_22, %c0_23, %c0_24], %32 {strides = array<i32>} : memref<1x8x8xf32, #tpu.memory_space<vmem>>, vector<1x8x8xf32>,
    return
  }
  func.func @transform_0(%arg0: i32, %arg1: i32) -> (i32, i32, i32) {
    %c0_i32 = arith.constant 0 : i32
    %c0_i32_0 = arith.constant 0 : i32
    return %arg0, %arg1, %c0_i32 : i32, i32, i32
  }
  func.func @transform_1(%arg0: i32, %arg1: i32) -> (i32, i32, i32) {
    %c0_i32 = arith.constant 0 : i32
    %c0_i32_0 = arith.constant 0 : i32
    %c0_i32_1 = arith.constant 0 : i32
    return %arg0, %c0_i32, %c0_i32_0 : i32, i32, i32
  }
  func.func @transform_2(%arg0: i32, %arg1: i32) -> (i32, i32, i32) {
    %c0_i32 = arith.constant 0 : i32
    %c0_i32_0 = arith.constant 0 : i32
    %c0_i32_1 = arith.constant 0 : i32
    return %arg0, %c0_i32, %c0_i32_0 : i32, i32, i32
  }
  func.func @transform_3(%arg0: i32, %arg1: i32) -> (i32, i32, i32) {
    %c0_i32 = arith.constant 0 : i32
    %c0_i32_0 = arith.constant 0 : i32
    return %arg0, %arg1, %c0_i32 : i32, i32, i32
  }
  func.func @transform_4(%arg0: i32, %arg1: i32) -> (i32, i32) {
    %c0_i32 = arith.constant 0 : i32
    %c0_i32_0 = arith.constant 0 : i32
    %c0_i32_1 = arith.constant 0 : i32
    return %c0_i32, %c0_i32_0 : i32, i32
  }
  func.func @transform_5(%arg0: i32, %arg1: i32) -> (i32, i32, i32) {
    %c0_i32 = arith.constant 0 : i32
    %c0_i32_0 = arith.constant 0 : i32
    return %arg0, %arg1, %c0_i32 : i32, i32, i32
  }
  func.func @transform_6(%arg0: i32, %arg1: i32) -> (i32, i32, i32) {
    %c0_i32 = arith.constant 0 : i32
    %c0_i32_0 = arith.constant 0 : i32
    return %arg0, %arg1, %c0_i32 : i32, i32, i32
  }
}

</mosaic_0001>

<bundles_post_ra>
// kernel: tpu_custom_call.1
= control target key start
LH: loop header
LB: loop body
LE: loop exit
PB: predicated region body
PF: predicated region fallthrough
CT: control target
= control target key end

     0   :  { %s1583_s0 = inlined_call_operand.hbm [shape: f32[2,8,32], index: 0, kind: input, shape index: {}]   ;;  %s1584_s1 = inlined_call_operand.hbm [shape: f32[2,8,32], index: 1, kind: input, shape index: {}]   ;;  %s1585_s2 = inlined_call_operand.hbm [shape: f32[2,8,32], index: 2, kind: input, shape index: {}]   ;;  %s1586_s3 = inlined_call_operand.vmem [shape: s8[2,8,8], index: 3, kind: input, shape index: {}]   ;;  %s1587_s4 = inlined_call_operand.hbm [shape: f32[32,32], index: 4, kind: input, shape index: {}]   ;;  %s1588_s5 = inlined_call_operand.hbm [shape: f32[2,8,32], index: 5, kind: output, shape index: {0}]   ;;  %s1589_s6 = inlined_call_operand.hbm [shape: f32[2,8,8], index: 6, kind: output, shape index: {1}]  }
   0x1   :  { %1598 = sst [smem:[#allocation23_spill]] %s1584_s1 }
   0x2   :  { %12 = vsyncpa [#allocation3], 0 }
   0x3   :  { %14 = vsyncpa [#allocation3 + $0x1], 0 }
   0x4   :  { %15 = vsyncpa [#allocation6], 0 }
   0x5   :  { %17 = vsyncpa [#allocation6 + $0x1], 0 }
   0x6   :  { %18 = vsyncpa [#allocation9], 0 }
   0x7   :  { %19 = vsyncpa [#allocation4], 0 }
   0x8   :  { %21 = vsyncpa [#allocation4 + $0x1], 0 }
   0x9   :  { %22 = vsyncpa [#allocation12], 0 }
   0xa   :  { %24 = vsyncpa [#allocation12 + $0x1], 0  ;;  %s1311_s21 = smov 0   ;;  %s1313_s22 = smov 0  }
   0xb   :  { %s1315_s23 = smov 0   ;;  %s1317_s24 = smov 0  }
   0xc   :  { %s1319_s25 = smov 0   ;;  %s1321_s26 = smov 0  }
   0xd LB: > { %1599 = sst [smem:[#allocation18_spill]] %s1259_s25  ;;  %s42_s27 = sadd.s32 1, %s1259_s25  ;;  %s1263_s26 = sphi %s1321_s26, %s30_s26   ;;  %s1259_s25 = sphi %s1319_s25, %s1622_s25   ;;  %s1255_s24 = sphi %s1317_s24, %s1621_s24   ;;  %s1251_s23 = sphi %s1315_s23, %s1625_s23   ;;  %s1247_s22 = sphi %s1313_s22, %s1624_s22   ;;  %s1243_s21 = sphi %s1311_s21, %s1623_s21  }
   0xe   : > { %1600 = sst [smem:[#allocation19_spill]] %s1263_s26  ;;  %s51_s28 = sadd.s32 1, %s1251_s23 }
   0xf   : > { %p44_p0 = scmp.ge.s32.totalorder %s42_s27, 2  ;;  %p58_p1 = scmp.ne.s32.totalorder %s1251_s23, %s1247_s22 }
  0x10   : > { %p59_p2 = scmp.eq.s32.totalorder %s1263_s26, 0  ;;  %p974_p5 = scmp.lt.s32.totalorder %s1263_s26, 2 }
  0x11   : > { %s1627_s27 = smov (%p44_p0, %s42_s27), 0  ;;  %s1590_s30 = sand.u32 1, %s1251_s23  }
  0x12   : > { %1601 = sst [smem:[#allocation20_spill]] %s1627_s27  ;;  %p60_p4 = por %p59_p2, %p58_p1 }
  0x13   : > { %s46_s29 = ssub.s32 %s1259_s25, %s1627_s27  ;;  %s1358_s7 = sshll.u32 %s1590_s30, 3 }
  0x14   : > { %p49_p6 = scmp.eq.s32.totalorder %s46_s29, 0  ;;  %s1361_s8 = sshll.u32 %s1259_s25, 7 }
  0x15   : > { %p1363_p7 = pnand %p974_p5, %p60_p4  ;;  %s277_s11 = sand.u32 1, %s1263_s26  }
  0x16   : > { %s1368_s10 = scalar_select %p49_p6, %s1251_s23, %s51_s28  }
  0x17   : > { %s1604_s1 = sld [smem:[#allocation23_spill]]  ;;  %s281_s15 = scalar_lea.vmem [#allocation5], %s1358_s7 }
  0x18   : > { %1603 = sst [smem:[#allocation21_spill]] %s1368_s10  ;;  %s288_s16 = sshll.u32 %s281_s15, 4  ;;  %s289_s16 = int_to_ptr.vmem [resolvable:$true] %s288_s16 }
  0x19   : > { %s1376_s17 = scalar_lea.sflag [#allocation6], %s277_s11  ;;  %p1592_p8 = pneg %p1363_p7 }
  0x1a   : > { %s1048_s18 = scalar_lea.vmem %s289_s16, 128  ;;  %s1265_s19 = smov [#allocation5]  }
  0x1b   : > { %p1049_p9 = scmp.ne.s32.totalorder %s289_s16, %s1048_s18  ;;  %s1053_s20 = sshll.u32 %s1265_s19, 4  ;;  %s1054_s20 = int_to_ptr.vmem [resolvable:$false] %s1053_s20 }
  0x1c   : > { %s1055_s28 = scalar_lea.vmem %s1054_s20, 256  ;;  %p1056_p12 = scmp.lt.s32.totalorder %s289_s16, %s1054_s20 }
  0x1d   : > { %s286_s14 = scalar_lea.hbm %s1604_s1, %s1361_s8  ;;  %p1051_p10 = pnand %p1049_p9, %p1592_p8 }
  0x1e   : > { %p1057_p13 = scmp.lt.s32.totalorder %s1055_s28, %s1048_s18 }
  0x1f   : > { %p1052_p11 = pneg %p1051_p10 }
  0x20   : > { %p1058_p0 = por %p1057_p13, %p1056_p12 }
  0x22   : > { %p1059_p2 = pnand %p1058_p0, %p1052_p11 }
  0x24   : > { %1062 = shalt.err (!%p1059_p2)
}
  0x25   : > { %962 = dma.hbm_to_vmem [thread:$0]  (!%p1363_p7), %s286_s14, 128, %s289_s16, %s1376_s17  }
  0x26   : > { %s1387_s29 = sadd.s32 4294967295, %s1263_s26   ;;  %s880_s11 = sadd.s32 4294967294, %s1263_s26  }
  0x27   : > { %p64_p4 = scmp.ne.s32.totalorder %s1247_s22, %s1243_s21  ;;  %p1591_p5 = scmp.eq.s32.totalorder %s1387_s29, 0 }
  0x28   : > { %p191_p6 = scmp.eq.s32.totalorder %s1387_s29, 1  ;;  %p197_p9 = scmp.eq.s32.totalorder %s880_s11, 1 }
  0x29   : > { %p881_p10 = scmp.ge.s32.totalorder %s1263_s26, 1  ;;  %p1397_p11 = por %p1591_p5, %p64_p4 }
  0x2a   : > { %p1404_p12 = por %p191_p6, %p58_p1  ;;  %p1408_p13 = por %p197_p9, %p64_p4 }
  0x2b   : > { %p232_p0 = scmp.lt.s32.totalorder %s1263_s26, 3  ;;  %s1266_s16 = smov [#allocation8]  }
  0x2c   : > { %s1607_s14 = scalar_select %p1408_p13, 1, 0 }
  0x2d   : > { %p1413_p2 = pnand %p881_p10, %p232_p0  ;;  %s244_s18 = sshll.u32 %s1266_s16, 4  ;;  %s245_s18 = int_to_ptr.vmem [resolvable:$true] %s244_s18 }
  0x2e   : > { %1608 = sst [smem:[#allocation22_spill]] %s1607_s14  ;;  %s262_s30 = scalar_lea.vmem [#allocation2], %s1358_s7 }
  0x2f   : > { %p952_p3 = pneg %p1413_p2  ;;  %s270_s1 = sshll.u32 %s262_s30, 4  ;;  %s1430_s1 = int_to_ptr.vmem [resolvable:$true] %s270_s1 }
  0x30   : > { %s1074_s16 = scalar_lea.vmem %s245_s18, 512  ;;  %p1082_p0 = scmp.lt.s32.totalorder %s245_s18, %s245_s18 }
  0x31   : > { %p1421_p1 = pnand %p952_p3, %p1591_p5  ;;  %p1075_p6 = scmp.ne.s32.totalorder %s245_s18, %s1074_s16 }
  0x32   : > { %p1083_p3 = scmp.lt.s32.totalorder %s1074_s16, %s1074_s16 }
  0x33   : > { %p1065_p4 = pneg %p1421_p1 }
  0x34   : > { %p1084_p5 = por %p1083_p3, %p1082_p0 }
  0x35   : > { %p1077_p9 = pnand %p1075_p6, %p1065_p4 }
  0x37   : > { %p1078_p10 = pneg %p1077_p9 }
  0x39   : > { %p1085_p8 = pnand %p1084_p5, %p1078_p10 }
  0x3b   : > { %1088 = shalt.err (!%p1085_p8)
}
  0x3c   : > { %s1267_s27 = smov 128   ;;  %s1268_s30 = smov 8  }
  0x3d   : > { %955 = dma.hbm_to_vmem [thread:$0]  (!%p1421_p1), %s1587_s4, 512, %s245_s18, [#allocation9], %s1267_s27, %s1267_s27, %s1268_s30  }
  0x3e   : > { %s1611_s11 = sand.u32 1, %s1251_s23   ;;  %s1102_s10 = scalar_lea.vmem %s1430_s1, 128 }
  0x3f   : > { %s259_s25 = scalar_lea.sflag [#allocation3], %s1611_s11  ;;  %p1103_p4 = scmp.ne.s32.totalorder %s1430_s1, %s1102_s10 }
  0x40   : > { %p1612_p5 = pneg %p1363_p7  ;;  %s1269_s16 = smov [#allocation2]  }
  0x41   : > { %s1107_s26 = sshll.u32 %s1269_s16, 4  ;;  %s1108_s26 = int_to_ptr.vmem [resolvable:$false] %s1107_s26 }
  0x42   : > { %p1105_p8 = pnand %p1103_p4, %p1612_p5  ;;  %s1109_s14 = scalar_lea.vmem %s1108_s26, 256 }
  0x43   : > { %p1110_p9 = scmp.lt.s32.totalorder %s1430_s1, %s1108_s26  ;;  %p1111_p10 = scmp.lt.s32.totalorder %s1109_s14, %s1102_s10 }
  0x44   : > { %p1106_p6 = pneg %p1105_p8 }
  0x45   : > { %p1112_p0 = por %p1111_p10, %p1110_p9 }
  0x47   : > { %p1113_p3 = pnand %p1112_p0, %p1106_p6 }
  0x49   : > { %1116 = shalt.err (!%p1113_p3)
}
  0x4a   : > { %s1613_s19 = scalar_lea.hbm %s1583_s0, %s1361_s8  ;;  %s304_s26 = scalar_lea.hbm %s1585_s2, %s1361_s8 }
  0x4b   : > { %959 = dma.hbm_to_vmem [thread:$0]  (!%p1363_p7), %s1613_s19, 128, %s1430_s1, %s259_s25  }
  0x4c   : > { %s299_s10 = scalar_lea.vmem [#allocation7], %s1358_s7  ;;  %p1614_p4 = pmov %p1612_p5 }
  0x4d   : > { %s306_s14 = sshll.u32 %s299_s10, 4  ;;  %s1270_s28 = smov [#allocation7]   ;;  %s307_s14 = int_to_ptr.vmem [resolvable:$true] %s306_s14 }
  0x4e   : > { %s1130_s20 = scalar_lea.vmem %s307_s14, 128  ;;  %s1135_s16 = sshll.u32 %s1270_s28, 4  ;;  %s1136_s16 = int_to_ptr.vmem [resolvable:$false] %s1135_s16 }
  0x4f   : > { %p1131_p1 = scmp.ne.s32.totalorder %s307_s14, %s1130_s20  ;;  %s1137_s27 = scalar_lea.vmem %s1136_s16, 256 }
  0x50   : > { %p1138_p6 = scmp.lt.s32.totalorder %s307_s14, %s1136_s16  ;;  %p1139_p9 = scmp.lt.s32.totalorder %s1137_s27, %s1130_s20 }
  0x51   : > { %p1133_p5 = pnand %p1131_p1, %p1614_p4 }
  0x52   : > { %p1140_p10 = por %p1139_p9, %p1138_p6 }
  0x53   : > { %p1134_p8 = pneg %p1133_p5 }
  0x55   : > { %p1141_p0 = pnand %p1140_p10, %p1134_p8 }
  0x57   : > { %1144 = shalt.err (!%p1141_p0)
}
  0x58   : > { %965 = dma.hbm_to_vmem [thread:$0]  (!%p1363_p7), %s304_s26, 128, %s307_s14, %s1376_s17  }
  0x59   : > { %325 = sbr.rel (%p1413_p2) target bundleno = 1017 (0x3f9), region = 40  ;;  %s1469_s1 = sand.u32 (!%p1413_p2), 1, %s1247_s22  }
  0x5a   : > { %s1472_s25 = sshll.u32 (!%p1413_p2), %s1469_s1, 3  ;;  %s328_s7 = scalar_lea.sflag (!%p1413_p2), [#allocation3], %s1469_s1 }
  0x5b   : > { %s331_s8 = scalar_lea.vmem (!%p1413_p2), [#allocation2], %s1472_s25 }
  0x5e   : > { %1222 = dma.done.wait (%p1397_p11), %s328_s7, 128  }
  0x5f   : > { %1224 = vsyncadd (%p1397_p11), %s328_s7, 4294967168  ;;  %s336_s9 = sand.u32 1, %s1387_s29   ;;  %s340_s15 = scalar_lea.vmem [#allocation5], %s1472_s25 }
  0x60   : > { %s337_s17 = scalar_lea.sflag [#allocation6], %s336_s9 }
  0x61   : > { %1226 = dma.done.wait (%p1397_p11), %s337_s17, 256  }
  0x62   : > { %1228 = vsyncadd (%p1397_p11), %s337_s17, 4294967040  ;;  %s349_s18 = scalar_lea.vmem [#allocation7], %s1472_s25  ;;  %p1615_p7 = scmp.eq.s32.totalorder %s1387_s29, 0 }
  0x64   : > { %1230 = dma.done.wait (%p1615_p7), [#allocation9], 512   ;;  %p1616_p2 = pmov %p1615_p7 }
  0x65   : > { %v1271_v0 = vmov 0.0   ;;  %vm1272_vm0 = vmmov 0   ;;  %v419_v1 = vld [vmem:[#allocation8 + $0x18] sm:$0xff]  ;;  %v418_v2 = vld [vmem:[#allocation8 + $0x10] sm:$0xff]  ;;  %vm421_vm1 = vcmask 261120   ;;  %v414_v4 = vld [vmem:[%s340_s15] sm:$0xff] }
  0x66   : > { %1232 = vsyncadd (%p1616_p2), [#allocation9], 4294966784  ;;  %917 = vmatprep.subr.mxu0 %v1271_v0  ;;  %925 = vmatprep.mubr.msk.f32.mxu0 %vm1272_vm0, %v1271_v0  ;;  %v413_v3 = vld [vmem:[%s331_s8] sm:$0xff]  ;;  %v417_v5 = vld [vmem:[#allocation8 + $0x8] sm:$0xff]  ;;  %p404_p11 = scmp.lt.s32.totalorder %s1255_s24, 1  ;;  %v1273_v11 = vmov 0  }
  0x67   : > { %928 = vmatprep.subr.mxu1 %v1271_v0  ;;  %930 = vmatprep.mubr.msk.f32.mxu1 %vm1272_vm0, %v1271_v0  ;;  %v416_v6 = vld [vmem:[#allocation8] sm:$0xff]  ;;  %v420_v7 = vmul.f32 0.17677669, %v413_v3  ;;  %vm577_vm4 = vcmask 64512   ;;  %v415_v23 = vld [vmem:[%s349_s18] sm:$0xff]  ;;  %s403_s26 = scalar_lea.vmem [#allocation11], %s1472_s25 }
  0x68   : > { %918 = vmatpush3.msra.mxu0 %v419_v1  ;;  %929 = vmatpush3.xpose.msk.msra.mxu1 %vm421_vm1, %v414_v4  ;;  %s405_s29 = scalar_select %p404_p11, %s1255_s24, 1 }
  0x69   : > { %919 = vmatprep.subr.mxu0 %v1271_v0  ;;  %933 = vmatprep.subr.mxu1 %v1271_v0  ;;  %s904_s10 = sshll.u32 %s1255_s24, 7  ;;  %s698_s16 = sshll.u32 %s403_s26, 4  ;;  %s699_s16 = int_to_ptr.vmem [resolvable:$true] %s698_s16 }
  0x6a   : > { %920 = vmatpush3.msra.mxu0 %v418_v2  ;;  %s897_s12 = sshll.u32 %s405_s29, 1  ;;  %s696_s28 = scalar_lea.hbm %s1589_s6, %s904_s10 }
  0x6b   : > { %921 = vmatprep.subr.mxu0 %v1271_v0  ;;  %s410_s30 = scalar_lea.vmem %s1586_s3, %s897_s12  ;;  %s670_s27 = scalar_lea.sflag [#allocation12], %s1469_s1 }
  0x6c   : > { %922 = vmatpush3.msra.mxu0 %v417_v5  ;;  %v571_v10 = vld [vmem:[%s410_s30] sm:$0x3]  ;;  %s1145_s7 = scalar_lea.vmem %s699_s16, 128  ;;  %s1274_s8 = smov [#allocation11]  }
  0x6d   : > { %923 = vmatprep.subr.mxu0 %v1271_v0  ;;  %vm572_vm2 = vnez %v571_v10  ;;  %p1146_p3 = scmp.ne.s32.totalorder %s699_s16, %s1145_s7  ;;  %s1149_s9 = sshll.u32 %s1274_s8, 4  ;;  %s1150_s9 = int_to_ptr.vmem [resolvable:$false] %s1149_s9 }
  0x6e   : > { %924 = vmatpush3.msra.mxu0 %v416_v6  ;;  %v573_v12 = vsel %vm572_vm2, 16843009, %v1273_v11  ;;  %s1151_s17 = scalar_lea.vmem %s1150_s9, 256  ;;  %p1152_p5 = scmp.lt.s32.totalorder %s699_s16, %s1150_s9 }
  0x6f   : > { %926 = vmatmul.mubr.msk.f32.vlgmr.msra.gmra.mxu0 %vm421_vm1, %v420_v7  ;;  %v574_v13 = vunpack.c.0.s8 %v573_v12  ;;  %p1147_p1 = pnand %p1146_p3, %p1404_p12  ;;  %p1153_p8 = scmp.lt.s32.totalorder %s1151_s17, %s1145_s7 }
  0x71   : > { %vm575_vm3 = vcmp.ne.s32.totalorder %v574_v13, 0  ;;  %p1148_p4 = pneg %p1147_p1  ;;  %p1154_p6 = por %p1153_p8, %p1152_p5 }
  0x73   : > { %p1155_p9 = pnand %p1154_p6, %p1148_p4 }
 0x12f   : > { %v491_v8 = vpop.f32.mrf.mxu0 }
 0x130   : > { %931 = vmatmul.mubr.msk.f32.vlgmr.msra.gmra.mxu1 %vm421_vm1, %v491_v8 }
 0x131   : > { %v927_v9 = vpop.f32.mrf.mxu0  ;;  %935 = vmatprep.mubr.msk.f32.mxu1 %vm1272_vm0, %v1271_v0  ;;  %934 = vmatpush3.msra.mxu1 %v415_v23 }
 0x1f0   : > { %v567_v14 = vpop.f32.mrf.mxu1 }
 0x1f1   : > { %v576_v15 = vsel %vm575_vm3, -1e+09, %v567_v14 }
 0x1f2   : > { %v932_v16 = vpop.f32.mrf.mxu1  ;;  %v578_v17 = vsel %vm577_vm4, %v576_v15, -inf }
 0x1f3   : > { %579 = vmax.xlane.f32.xlu0 %v578_v17 }
 0x27c   : > { %v580_v18 = vpop.xlane.xlu0 %579 }
 0x27d   : > { %v581_v19 = vsub.f32 %v576_v15, %v580_v18 }
 0x27f   : > { %v582_v20 = vmul.f32 1.442695, %v581_v19 }
 0x281   : > { %1031 = vpow2.f32 %v582_v20 }
 0x28e   : > { %v1032_v21 = vpop.eup %1031 }
 0x28f   : > { %v584_v22 = vsel %vm577_vm4, %v1032_v21, 0.0 }
 0x290   : > { %585 = vadd.xlane.f32.xlu0 %v584_v22 }
 0x319   : > { %v586_v24 = vpop.xlane.xlu0 %585 }
 0x31a   : > { %1033 = vrcp.f32 %v586_v24 }
 0x327   : > { %v1034_v25 = vpop.eup %1033 }
 0x328   : > { %v588_v26 = vmul.f32 %v1034_v25, %v1032_v21 }
 0x32a   : > { %936 = vmatmul.mubr.msk.f32.vlgmr.msra.gmra.mxu1 %vm577_vm4, %v588_v26  ;;  %663 = vst.msk [vmem:[%s403_s26] sm:$0xff] %vm577_vm4, %v588_v26 }
 0x32b   : > { %1158 = shalt.err (!%p1155_p9)
}
 0x32c   : > { %s1159_s15 = scalar_lea.hbm %s696_s28, 128  ;;  %s1163_s12 = scalar_lea.hbm %s1589_s6, 256 }
 0x32d   : > { %p1160_p10 = scmp.ne.s32.totalorder %s696_s28, %s1159_s15  ;;  %p1164_p2 = scmp.lt.s32.totalorder %s696_s28, %s1589_s6 }
 0x32e   : > { %p1165_p11 = scmp.lt.s32.totalorder %s1163_s12, %s1159_s15 }
 0x32f   : > { %p1161_p0 = pnand %p1160_p10, %p1404_p12 }
 0x330   : > { %p1166_p3 = por %p1165_p11, %p1164_p2 }
 0x331   : > { %p1162_p7 = pneg %p1161_p0 }
 0x333   : > { %p1167_p1 = pnand %p1166_p3, %p1162_p7 }
 0x335   : > { %1170 = shalt.err (!%p1167_p1)
}
 0x336   : > { %949 = dma.vmem_to_hbm [thread:$0]  (%p1404_p12), %s699_s16, 128, %s696_s28, %s670_s27  }
 0x337   : > { %s396_s30 = scalar_lea.vmem [#allocation10], %s1472_s25  ;;  %s1534_s7 = scalar_lea.hbm %s1588_s5, %s904_s10 }
 0x338   : > { %s684_s26 = sshll.u32 %s396_s30, 4  ;;  %s665_s8 = scalar_lea.sflag [#allocation4], %s1469_s1  ;;  %s1536_s26 = int_to_ptr.vmem [resolvable:$true] %s684_s26 }
 0x339   : > { %s1171_s9 = scalar_lea.vmem %s1536_s26, 128  ;;  %s1275_s24 = smov [#allocation10]  }
 0x33a   : > { %p1172_p4 = scmp.ne.s32.totalorder %s1536_s26, %s1171_s9  ;;  %s1175_s25 = sshll.u32 %s1275_s24, 4  ;;  %s1176_s25 = int_to_ptr.vmem [resolvable:$false] %s1175_s25 }
 0x33b   : > { %s1177_s10 = scalar_lea.vmem %s1176_s25, 256  ;;  %p1178_p6 = scmp.lt.s32.totalorder %s1536_s26, %s1176_s25 }
 0x33c   : > { %p1173_p5 = pnand %p1172_p4, %p1404_p12  ;;  %p1179_p9 = scmp.lt.s32.totalorder %s1177_s10, %s1171_s9 }
 0x33e   : > { %p1174_p8 = pneg %p1173_p5  ;;  %p1180_p10 = por %p1179_p9, %p1178_p6 }
 0x340   : > { %p1181_p0 = pnand %p1180_p10, %p1174_p8 }
 0x3ea   : > { %v658_v27 = vpop.f32.mrf.mxu1 }
 0x3eb   : > { %662 = vst.msk [vmem:[%s396_s30] sm:$0xff] %vm421_vm1, %v658_v27 }
 0x3ec   : > { %v937_v28 = vpop.f32.mrf.mxu1 }
 0x3ed   : > { %1184 = shalt.err (!%p1181_p0)
}
 0x3ee   : > { %s1185_s28 = scalar_lea.hbm %s1534_s7, 128  ;;  %s1189_s27 = scalar_lea.hbm %s1588_s5, 256 }
 0x3ef   : > { %p1186_p7 = scmp.ne.s32.totalorder %s1534_s7, %s1185_s28  ;;  %p1190_p3 = scmp.lt.s32.totalorder %s1534_s7, %s1588_s5 }
 0x3f0   : > { %p1191_p1 = scmp.lt.s32.totalorder %s1189_s27, %s1185_s28 }
 0x3f1   : > { %p1187_p2 = pnand %p1186_p7, %p1404_p12 }
 0x3f2   : > { %p1192_p4 = por %p1191_p1, %p1190_p3 }
 0x3f3   : > { %p1188_p11 = pneg %p1187_p2 }
 0x3f5   : > { %p1193_p5 = pnand %p1192_p4, %p1188_p11 }
 0x3f7   : > { %1196 = shalt.err (!%p1193_p5)
}
 0x3f8   : > { %948 = dma.vmem_to_hbm [thread:$0]  (%p1404_p12), %s1536_s26, 128, %s1534_s7, %s665_s8  }
 0x3f9 PF: > { %s1618_s29 = sld [smem:[#allocation19_spill]]  ;;  %s710_s12 = sand.u32 1, %s1243_s21  }
 0x3fa   : > { %s711_s19 = scalar_lea.sflag [#allocation4], %s710_s12 }
 0x3ff   : > { %p1619_p8 = scmp.ge.s32.totalorder %s1618_s29, 2 }
 0x401   : > { %p967_p6 = pnand %p1619_p8, %p1408_p13 }
 0x403   : > { %p968_p9 = pneg %p967_p6 }
 0x405   : > { %1234 = dma.done.wait (%p968_p9), %s711_s19, 128  }
 0x406   : > { %1236 = vsyncadd (%p968_p9), %s711_s19, 4294967168  ;;  %s720_s11 = scalar_lea.sflag [#allocation12], %s710_s12 }
 0x407   : > { %1238 = dma.done.wait (%p968_p9), %s720_s11, 128  }
 0x408   : > { %1240 = vsyncadd (%p968_p9), %s720_s11, 4294967168  ;;  %s30_s26 = sadd.s32 1, %s1618_s29   ;;  %s1620_s13 = sld [smem:[#allocation21_spill]] }
 0x409   : > { %p27_p10 = scmp.ge.s32.totalorder %s30_s26, 4   ;;  %s1621_s24 = sld [smem:[#allocation18_spill]] }
 0x40a   : > { %s1622_s25 = sld [smem:[#allocation20_spill]]  ;;  %s1623_s21 = smov %s1247_s22 }
 0x40b   : > { %s1624_s22 = smov %s1251_s23  ;;  %29 = sbr.rel (!%p27_p10) target bundleno = 13 (0xd), region = 133 }
 0x40e   : > { %s1625_s23 = smov %s1620_s13 }
 0x410   :  { %725 = vsyncpa [#allocation3], 1 }
 0x411   :  { %727 = vsyncpa [#allocation3 + $0x1], 1 }
 0x412   :  { %728 = vsyncpa [#allocation6], 1 }
 0x413   :  { %730 = vsyncpa [#allocation6 + $0x1], 1 }
 0x414   :  { %731 = vsyncpa [#allocation9], 1 }
 0x415   :  { %732 = vsyncpa [#allocation4], 1 }
 0x416   :  { %734 = vsyncpa [#allocation4 + $0x1], 1 }
 0x417   :  { %735 = vsyncpa [#allocation12], 1 }
 0x418   :  { %737 = vsyncpa [#allocation12 + $0x1], 1 }

</bundles_post_ra>
